<compile_context>
chip_gen: v5e
topology: v5e:2x2
jax: 0.10.0
libtpu: 0.0.40
codegen_flags: <defaults>
</compile_context>

<pallas_src>
import functools
import math

import jax
import jax.numpy as jnp
from jax.experimental import pallas as pl
from jax.experimental.pallas import tpu as pltpu


def layernorm_kernel(x_ref, a_ref, b_ref, o_ref, *, eps: float):
    # One block of rows; the normalized feature axis is the lane (last) axis.
    x = x_ref[...].astype(jnp.float32)          # (TM, H)
    a = a_ref[...].astype(jnp.float32)          # (1, H)
    b = b_ref[...].astype(jnp.float32)          # (1, H)

    n = x.shape[-1]

    # One-pass statistics: a single sweep over x feeds both reductions, so the
    # two XLU reduction chains are independent instead of serialized.
    s = jnp.sum(x, axis=-1, keepdims=True)                  # (TM, 1)
    sq = jnp.sum(x * x, axis=-1, keepdims=True)             # (TM, 1)
    mean = s * (1.0 / n)
    # torch.std default: unbiased estimator (divide by N-1).
    var = (sq - n * mean * mean) * (1.0 / (n - 1))
    var = jnp.maximum(var, 0.0)                             # guard fp cancellation
    std = jnp.sqrt(var)

    # Per-row reciprocal (TM exact divides) instead of a (TM, H) division.
    inv = 1.0 / (std + eps)                                 # (TM, 1)

    y = b + a * ((x - mean) * inv)
    o_ref[...] = y.astype(o_ref.dtype)


def _choose_block_rows(rows: int, hidden: int, itemsize: int,
                       vmem_budget_bytes: int = 24 << 20) -> int:
    """Pick the largest row tile whose double-buffered footprint fits the budget.

    Footprint ~= 4 * block_rows * H * 4B (x in + out, 2 buffers each; f32
    temporaries in-kernel), which stays safe on v5e/v6e (128 MiB VMEM) and
    v7x (64 MiB VMEM) with the default 24 MiB budget.
    """
    bytes_per_row = 4 * hidden * 4  # conservative: f32 accumulation in-kernel
    max_rows = max(8, vmem_budget_bytes // bytes_per_row)
    max_rows = min(max_rows, 1024)

    # Sublane granularity: 8 rows for 4-byte dtypes, 16 for 2-byte (bf16) packing.
    sublane = 16 if itemsize == 2 else 8

    rows_rounded = -(-rows // sublane) * sublane            # ceil to sublane mult
    block_rows = min(max_rows, rows_rounded)
    block_rows = max(sublane, (block_rows // sublane) * sublane)
    return block_rows


def layer_norm(x: jax.Array, a: jax.Array, b: jax.Array, eps: float = 1e-6,
               *, block_rows: int | None = None) -> jax.Array:
    """x: (..., H); a, b: (H,). Normalizes over the last axis."""
    orig_shape = x.shape
    H = orig_shape[-1]
    assert H >= 2, "feature dim must be >= 2 for the unbiased (N-1) estimator"

    x2 = x.reshape(-1, H)                                   # (R, H)
    R = x2.shape[0]

    if block_rows is None:
        block_rows = _choose_block_rows(R, H, jnp.dtype(x.dtype).itemsize)

    # Pad rows so any R works with the performance-optimal tile; pad rows are
    # all-zero (mean=0, std=0 -> output = b, no NaN) and sliced off below.
    R_pad = pl.cdiv(R, block_rows) * block_rows
    if R_pad != R:
        x2 = jnp.pad(x2, ((0, R_pad - R), (0, 0)))

    a2 = a.reshape(1, H)
    b2 = b.reshape(1, H)

    kernel = functools.partial(layernorm_kernel, eps=eps)

    out = pl.pallas_call(
        kernel,
        out_shape=jax.ShapeDtypeStruct((R_pad, H), x.dtype),
        grid_spec=pltpu.PrefetchScalarGridSpec(
            num_scalar_prefetch=0,
            grid=(R_pad // block_rows,),
            in_specs=[
                pl.BlockSpec((block_rows, H), lambda i: (i, 0)),   # x rows tile
                pl.BlockSpec((1, H), lambda i: (0, 0)),            # gamma (a)
                pl.BlockSpec((1, H), lambda i: (0, 0)),            # beta  (b)
            ],
            out_specs=pl.BlockSpec((block_rows, H), lambda i: (i, 0)),
        ),
        compiler_params=pltpu.CompilerParams(
            dimension_semantics=("parallel",),
            vmem_limit_bytes=48 * 1024 * 1024,
        ),
    )(x2, a2, b2)

    if R_pad != R:
        out = out[:R]
    return out.reshape(orig_shape)


if __name__ == "__main__":
    # Small shapes consistent with a Transformer LayerNorm: (batch, seq, hidden)
    batch, seq, hidden = 2, 8, 32
    eps = 1e-6

    key = jax.random.PRNGKey(0)
    x = jax.random.normal(key, (batch, seq, hidden), dtype=jnp.float32)

    # Deterministic parameter init matching nn.Parameter(torch.ones/zeros(features))
    a = jnp.ones((hidden,), dtype=jnp.float32)
    b = jnp.zeros((hidden,), dtype=jnp.float32)

    out = layer_norm(x, a, b, eps)
    jax.block_until_ready(out)

    # Reference check (pure JAX, same unbiased-std semantics as torch.std)
    mean = jnp.mean(x, axis=-1, keepdims=True)
    std = jnp.sqrt(jnp.sum((x - mean) ** 2, axis=-1, keepdims=True) / (hidden - 1))
    ref = b + a * (x - mean) / (std + eps)
    assert jnp.allclose(out, ref, atol=1e-5, rtol=1e-5)

    print("KERNEL_OK")
</pallas_src>

<mosaic_0001>
module attributes {stable_mosaic.version = 11 : i64} {
  func.func @layernorm_kernel(%arg0: i32, %arg1: memref<16x32xf32, #tpu.memory_space<vmem>>, %arg2: memref<1x32xf32, #tpu.memory_space<vmem>>, %arg3: memref<1x32xf32, #tpu.memory_space<vmem>>, %arg4: memref<16x32xf32, #tpu.memory_space<vmem>>) attributes {dimension_semantics = [#tpu.dimension_semantics<parallel>], iteration_bounds = array<i64: 1>, scalar_prefetch = 0 : i64, scratch_operands = 0 : i64, tpu.core_type = #tpu.core_type<tc>, window_params = [{transform_indices = @transform_0, window_bounds = array<i64: 16, 32>}, {pipeline_mode = #tpu.pipeline_mode<synchronous>, transform_indices = @transform_1, window_bounds = array<i64: 1, 32>}, {pipeline_mode = #tpu.pipeline_mode<synchronous>, transform_indices = @transform_2, window_bounds = array<i64: 1, 32>}, {transform_indices = @transform_3, window_bounds = array<i64: 16, 32>}]} {
    %c0 = arith.constant 0 : index
    %c0_0 = arith.constant 0 : index
    %0 = vector.load %arg1[%c0, %c0_0] : memref<16x32xf32, #tpu.memory_space<vmem>>, vector<16x32xf32>
    %c0_1 = arith.constant 0 : index
    %c0_2 = arith.constant 0 : index
    %1 = vector.load %arg2[%c0_1, %c0_2] : memref<1x32xf32, #tpu.memory_space<vmem>>, vector<1x32xf32>
    %c0_3 = arith.constant 0 : index
    %c0_4 = arith.constant 0 : index
    %2 = vector.load %arg3[%c0_3, %c0_4] : memref<1x32xf32, #tpu.memory_space<vmem>>, vector<1x32xf32>
    %cst = arith.constant dense<0.000000e+00> : vector<16xf32>
    %3 = vector.multi_reduction <add>, %0, %cst [1] : vector<16x32xf32> to vector<16xf32>
    %4 = vector.shape_cast %3 : vector<16xf32> to vector<16x1xf32>
    %5 = arith.mulf %0, %0 : vector<16x32xf32>
    %cst_5 = arith.constant dense<0.000000e+00> : vector<16xf32>
    %6 = vector.multi_reduction <add>, %5, %cst_5 [1] : vector<16x32xf32> to vector<16xf32>
    %7 = vector.shape_cast %6 : vector<16xf32> to vector<16x1xf32>
    %cst_6 = arith.constant 3.125000e-02 : f32
    %8 = vector.broadcast %cst_6 : f32 to vector<16x1xf32>
    %9 = arith.mulf %4, %8 : vector<16x1xf32>
    %cst_7 = arith.constant 3.200000e+01 : f32
    %10 = vector.broadcast %cst_7 : f32 to vector<16x1xf32>
    %11 = arith.mulf %10, %9 : vector<16x1xf32>
    %12 = arith.mulf %11, %9 : vector<16x1xf32>
    %13 = arith.subf %7, %12 : vector<16x1xf32>
    %cst_8 = arith.constant 0.0322580636 : f32
    %14 = vector.broadcast %cst_8 : f32 to vector<16x1xf32>
    %15 = arith.mulf %13, %14 : vector<16x1xf32>
    %cst_9 = arith.constant 0.000000e+00 : f32
    %16 = vector.broadcast %cst_9 : f32 to vector<16x1xf32>
    %17 = arith.maximumf %15, %16 : vector<16x1xf32>
    %18 = math.sqrt %17 : vector<16x1xf32>
    %cst_10 = arith.constant 9.99999997E-7 : f32
    %19 = vector.broadcast %cst_10 : f32 to vector<16x1xf32>
    %20 = arith.addf %18, %19 : vector<16x1xf32>
    %cst_11 = arith.constant 1.000000e+00 : f32
    %21 = vector.broadcast %cst_11 : f32 to vector<16x1xf32>
    %22 = arith.divf %21, %20 : vector<16x1xf32>
    %23 = vector.broadcast %9 : vector<16x1xf32> to vector<16x32xf32>
    %24 = arith.subf %0, %23 : vector<16x32xf32>
    %25 = vector.broadcast %22 : vector<16x1xf32> to vector<16x32xf32>
    %26 = arith.mulf %24, %25 : vector<16x32xf32>
    %27 = vector.broadcast %1 : vector<1x32xf32> to vector<16x32xf32>
    %28 = arith.mulf %27, %26 : vector<16x32xf32>
    %29 = vector.broadcast %2 : vector<1x32xf32> to vector<16x32xf32>
    %30 = arith.addf %29, %28 : vector<16x32xf32>
    %c0_12 = arith.constant 0 : index
    %c0_13 = arith.constant 0 : index
    %31 = vector.load %arg4[%c0_12, %c0_13] : memref<16x32xf32, #tpu.memory_space<vmem>>, vector<16x32xf32>
    tpu.vector_store %arg4[%c0_12, %c0_13], %30 {strides = array<i32>} : memref<16x32xf32, #tpu.memory_space<vmem>>, vector<16x32xf32>,
    return
  }
  func.func @transform_0(%arg0: i32) -> (i32, i32) {
    %c0_i32 = arith.constant 0 : i32
    %c0_i32_0 = arith.constant 0 : i32
    return %arg0, %c0_i32 : i32, i32
  }
  func.func @transform_1(%arg0: i32) -> (i32, i32) {
    %c0_i32 = arith.constant 0 : i32
    %c0_i32_0 = arith.constant 0 : i32
    %c0_i32_1 = arith.constant 0 : i32
    return %c0_i32, %c0_i32_0 : i32, i32
  }
  func.func @transform_2(%arg0: i32) -> (i32, i32) {
    %c0_i32 = arith.constant 0 : i32
    %c0_i32_0 = arith.constant 0 : i32
    %c0_i32_1 = arith.constant 0 : i32
    return %c0_i32, %c0_i32_0 : i32, i32
  }
  func.func @transform_3(%arg0: i32) -> (i32, i32) {
    %c0_i32 = arith.constant 0 : i32
    %c0_i32_0 = arith.constant 0 : i32
    return %arg0, %c0_i32 : i32, i32
  }
}

</mosaic_0001>

<bundles_post_ra>
// kernel: tpu_custom_call.1
= control target key start
LH: loop header
LB: loop body
LE: loop exit
PB: predicated region body
PF: predicated region fallthrough
CT: control target
= control target key end

     0   :  { %8 = vsyncpa [#allocation3], 0  ;;  %s332_s0 = inlined_call_operand.hbm [shape: f32[16,32], index: 0, kind: input, shape index: {}]   ;;  %s333_s1 = inlined_call_operand.hbm [shape: f32[1,32], index: 1, kind: input, shape index: {}]   ;;  %s334_s2 = inlined_call_operand.vmem [shape: f32[1,32], index: 2, kind: input, shape index: {}]   ;;  %s335_s3 = inlined_call_operand.hbm [shape: f32[16,32], index: 3, kind: output, shape index: {}]  }
   0x1   :  { %9 = vsyncpa [#allocation6], 0 }
   0x2   :  { %10 = vsyncpa [#allocation4], 0  ;;  %s15_s14 = sshll.u32 %s332_s0, 4  ;;  %s261_s15 = smov [#allocation2]   ;;  %s16_s14 = int_to_ptr.hbm [resolvable:$true] %s15_s14 }
   0x3   :  { %s17_s16 = sshll.u32 %s261_s15, 4  ;;  %s29_s19 = sshll.u32 %s333_s1, 4  ;;  %s18_s16 = int_to_ptr.vmem [resolvable:$true] %s17_s16  ;;  %s30_s19 = int_to_ptr.hbm [resolvable:$true] %s29_s19 }
   0x4   :  { %s262_s20 = smov 128   ;;  %s263_s21 = smov 8  }
   0x5   :  { %23 = dma.hbm_to_vmem [thread:$0]  %s16_s14, 256, %s18_s16, [#allocation3], %s262_s20, %s262_s20, %s263_s21  }
   0x6   :  { %s264_s22 = smov [#allocation5]  }
   0x7   :  { %s31_s23 = sshll.u32 %s264_s22, 4  ;;  %s32_s23 = int_to_ptr.vmem [resolvable:$true] %s31_s23 }
   0x8   :  { %34 = dma.hbm_to_vmem [thread:$0]  %s30_s19, 16, %s32_s23, [#allocation6]  }
   0x9   :  { %255 = dma.done.wait [#allocation3], 256  }
   0xa   :  { %256 = vsyncadd [#allocation3], 4294967040 }
   0xb   :  { %257 = dma.done.wait [#allocation6], 16  }
   0xc   :  { %258 = vsyncadd [#allocation6], 4294967280  ;;  %vm49_vm0 = vcmask 261120   ;;  %v295_v0 = vld [vmem:[#allocation2] sm:$0xff]  ;;  %v302_v4 = vld [vmem:[#allocation2 + $0x8] sm:$0xff]  ;;  %s154_s27 = sshll.u32 %s335_s3, 4  ;;  %s155_s27 = int_to_ptr.hbm [resolvable:$true] %s154_s27 }
   0xd   :  { %v50_v1 = vsel %vm49_vm0, %v295_v0, 0.0  ;;  %v56_v2 = vmul.f32 %v295_v0, %v295_v0  ;;  %v57_v5 = vmul.f32 %v302_v4, %v302_v4  ;;  %v53_v6 = vsel %vm49_vm0, %v302_v4, 0.0  ;;  %v173_v57 = vld [vmem:[#allocation5] ss:$0 sm:$0xff]  ;;  %v174_v61 = vld [vmem:[%s334_s2] ss:$0 sm:$0xff] }
   0xe   :  { %51 = vadd.xlane.f32.xlu0 %v50_v1  ;;  %s265_s2 = smov [#allocation7]  }
   0xf   :  { %v58_v3 = vsel %vm49_vm0, %v56_v2, 0.0  ;;  %v61_v7 = vsel %vm49_vm0, %v57_v5, 0.0  ;;  %s152_s24 = sshll.u32 %s265_s2, 4  ;;  %s153_s24 = int_to_ptr.vmem [resolvable:$true] %s152_s24 }
  0x10   :  { %59 = vadd.xlane.f32.xlu1 %v58_v3 }
  0x16   :  { %54 = vadd.xlane.f32.xlu0 %v53_v6 }
  0x18   :  { %62 = vadd.xlane.f32.xlu1 %v61_v7 }
  0x81   :  { %v52_v8 = vpop.xlane.xlu0 %51 }
  0x82   :  { %v309_v9 = vmul.f32 0.03125, %v52_v8 }
  0x83   :  { %v60_v10 = vpop.xlane.xlu1 %59 }
  0x84   :  { %v66_v11 = vmul.f32 32.0, %v309_v9  ;;  %v132_v55 = vsub.f32 %v295_v0, %v309_v9 }
  0x86   :  { %v68_v12 = vmul.f32 %v66_v11, %v309_v9 }
  0x88   :  { %v70_v13 = vsub.f32 %v60_v10, %v68_v12 }
  0x89   :  { %v55_v14 = vpop.xlane.xlu0 %54 }
  0x8a   :  { %v72_v15 = vmul.f32 0.032258064, %v70_v13  ;;  %v313_v16 = vmul.f32 0.03125, %v55_v14 }
  0x8b   :  { %v63_v19 = vpop.xlane.xlu1 %62 }
  0x8c   :  { %v74_v17 = vmax.f32 %v72_v15, 0.0  ;;  %v67_v18 = vmul.f32 32.0, %v313_v16  ;;  %v133_v7 = vsub.f32 %v302_v4, %v313_v16 }
  0x8e   :  { %175 = vrsqrt.f32 %v74_v17  ;;  %v69_v20 = vmul.f32 %v67_v18, %v313_v16  ;;  %vm83_vm1 = vcmp.eq.f32.partialorder %v74_v17, inf  ;;  %v86_v33 = vand.u32 2147483648, %v74_v17 }
  0x8f   :  { %vm85_vm2 = vcmp.eq.f32.partialorder %v74_v17, 0.0 }
  0x90   :  { %v71_v21 = vsub.f32 %v63_v19, %v69_v20 }
  0x92   :  { %v73_v22 = vmul.f32 0.032258064, %v71_v21 }
  0x94   :  { %v176_v23 = vpop.eup %175  ;;  %v75_v25 = vmax.f32 %v73_v22, 0.0 }
  0x95   :  { %v77_v24 = vmul.f32 %v176_v23, %v74_v17 }
  0x96   :  { %177 = vrsqrt.f32 %v75_v25  ;;  %vm95_vm3 = vcmp.eq.f32.partialorder %v75_v25, inf  ;;  %v98_v42 = vand.u32 2147483648, %v75_v25  ;;  %vm97_vm4 = vcmp.eq.f32.partialorder %v75_v25, 0.0 }
  0x97   :  { %v78_v26 = vmul.f32 %v176_v23, %v77_v24 }
  0x99   :  { %v79_v27 = vmul.f32 0.5, %v78_v26 }
  0x9b   :  { %v80_v28 = vsub.f32 1.5, %v79_v27 }
  0x9c   :  { %v178_v29 = vpop.eup %177 }
  0x9d   :  { %v81_v30 = vmul.f32 %v176_v23, %v80_v28  ;;  %v89_v31 = vmul.f32 %v178_v29, %v75_v25 }
  0x9f   :  { %v82_v32 = vmul.f32 %v81_v30, %v74_v17  ;;  %v90_v34 = vmul.f32 %v178_v29, %v89_v31 }
  0xa1   :  { %v84_v35 = vsel %vm83_vm1, %v74_v17, %v82_v32  ;;  %v91_v37 = vmul.f32 0.5, %v90_v34 }
  0xa2   :  { %v87_v36 = vsel %vm85_vm2, %v86_v33, %v84_v35 }
  0xa3   :  { %v100_v38 = vadd.f32 1e-06, %v87_v36  ;;  %v92_v39 = vsub.f32 1.5, %v91_v37 }
  0xa5   :  { %179 = vrcp.f32 %v100_v38  ;;  %v93_v40 = vmul.f32 %v178_v29, %v92_v39  ;;  %v113_v49 = vand.u32 2147483648, %v100_v38  ;;  %v111_v51 = vand.u32 2147483647, %v100_v38 }
  0xa6   :  { %vm107_vm6 = vweird.f32 %v100_v38 }
  0xa7   :  { %v94_v41 = vmul.f32 %v93_v40, %v75_v25  ;;  %v114_v53 = vor.u32 1.1754944e-38, %v113_v49  ;;  %vm112_vm8 = vcmp.eq.f32.partialorder %v111_v51, 8.507059e+37 }
  0xa9   :  { %v96_v43 = vsel %vm95_vm3, %v75_v25, %v94_v41 }
  0xaa   :  { %v99_v45 = vsel %vm97_vm4, %v98_v42, %v96_v43 }
  0xab   :  { %v180_v44 = vpop.eup %179  ;;  %v101_v46 = vadd.f32 1e-06, %v99_v45 }
  0xac   :  { %v103_v47 = vmul.f32 %v180_v44, %v100_v38  ;;  %vm108_vm5 = vweird.f32 %v180_v44 }
  0xad   :  { %181 = vrcp.f32 %v101_v46  ;;  %vm109_vm7 = vmor %vm107_vm6, %vm108_vm5  ;;  %v128_v63 = vand.u32 2147483648, %v101_v46  ;;  %v126_v3 = vand.u32 2147483647, %v101_v46  ;;  %vm122_vm10 = vweird.f32 %v101_v46 }
  0xae   :  { %v104_v48 = vsub.f32 1.0, %v103_v47 }
  0xaf   :  { %v129_v0 = vor.u32 1.1754944e-38, %v128_v63  ;;  %vm127_vm12 = vcmp.eq.f32.partialorder %v126_v3, 8.507059e+37 }
  0xb0   :  { %v105_v50 = vmul.f32 %v180_v44, %v104_v48 }
  0xb2   :  { %v106_v52 = vadd.f32 %v180_v44, %v105_v50 }
  0xb3   :  { %v182_v54 = vpop.eup %181 }
  0xb4   :  { %v110_v56 = vsel %vm109_vm7, %v180_v44, %v106_v52  ;;  %v118_v59 = vmul.f32 %v182_v54, %v101_v46  ;;  %vm123_vm9 = vweird.f32 %v182_v54 }
  0xb5   :  { %v115_v58 = vsel %vm112_vm8, %v114_v53, %v110_v56  ;;  %vm124_vm11 = vmor %vm122_vm10, %vm123_vm9 }
  0xb6   :  { %v134_v60 = vmul.f32 %v132_v55, %v115_v58  ;;  %v119_v62 = vsub.f32 1.0, %v118_v59 }
  0xb8   :  { %v139_v1 = vmul.f32 %v173_v57, %v134_v60  ;;  %v120_v2 = vmul.f32 %v182_v54, %v119_v62 }
  0xba   :  { %v144_v5 = vadd.f32 %v174_v61, %v139_v1  ;;  %v121_v6 = vadd.f32 %v182_v54, %v120_v2 }
  0xbc   :  { %146 = vst.msk [vmem:[#allocation7] sm:$0xff] %vm49_vm0, %v144_v5  ;;  %v125_v8 = vsel %vm124_vm11, %v182_v54, %v121_v6 }
  0xbd   :  { %v130_v9 = vsel %vm127_vm12, %v129_v0, %v125_v8 }
  0xbe   :  { %v135_v10 = vmul.f32 %v133_v7, %v130_v9 }
  0xc0   :  { %v140_v11 = vmul.f32 %v173_v57, %v135_v10 }
  0xc2   :  { %v145_v12 = vadd.f32 %v174_v61, %v140_v11 }
  0xc4   :  { %147 = vst.msk [vmem:[#allocation7 + $0x8] sm:$0xff] %vm49_vm0, %v145_v12 }
  0xc5   :  { %160 = dma.vmem_to_hbm [thread:$0]  %s153_s24, 256, %s155_s27, [#allocation4], %s262_s20, %s262_s20, %s263_s21  }
  0xc6   :  { %259 = dma.done.wait [#allocation4], 256  }
  0xc7   :  { %260 = vsyncadd [#allocation4], 4294967040 }
  0xc8   :  { %165 = vsyncpa [#allocation3], 1 }
  0xc9   :  { %166 = vsyncpa [#allocation6], 1 }
  0xca   :  { %167 = vsyncpa [#allocation4], 1 }

</bundles_post_ra>
